<compile_context>
chip_gen: v7x
topology: tpu7x:2x2x1
jax: 0.10.0
libtpu: 0.0.40
codegen_flags: <defaults>
</compile_context>

<pallas_src>
import functools

import jax
import jax.numpy as jnp
from jax import lax
from jax.experimental import pallas as pl
from jax.experimental.pallas import tpu as pltpu

_EPS = 1e-5


# ----------------------------------------------------------------------------
# Small helpers
# ----------------------------------------------------------------------------
def _round_up(x, m):
    return ((x + m - 1) // m) * m


def _device_kind():
    try:
        return jax.devices()[0].device_kind.lower()
    except Exception:
        return ""


def _vmem_limit_bytes():
    # ~75% of the chip's real VMEM: ~96 MiB on v5e/v6e (128 MiB), ~48 MiB on v7x.
    try:
        cap = int(pltpu.get_tpu_info().vmem_capacity_bytes)
    except Exception:
        cap = 64 << 20          # conservative fallback (v7x-sized)
    return (cap * 3) // 4


def _point_axis_semantics():
    # v7x has 2 TensorCores per chip; CORE_PARALLEL actually shards the point-tile
    # loop across them (plain "parallel" has near-zero measured codegen effect).
    if "v7" in _device_kind():
        return (pltpu.CORE_PARALLEL,)
    return (pltpu.PARALLEL,)


def _compiler_params(vmem_limit):
    return pltpu.CompilerParams(dimension_semantics=_point_axis_semantics(),
                                vmem_limit_bytes=vmem_limit)


def _pick_tile_p(p, act_dtype, vmem_limit):
    """Generation- and dtype-aware point-tile size (always a multiple of 128)."""
    big_vmem = vmem_limit >= (72 << 20)              # v5e / v6e class (128 MiB VMEM)
    if act_dtype == jnp.bfloat16:
        target = 4096 if big_vmem else 2048
    else:
        target = 2048 if big_vmem else 1024
    return min(target, _round_up(p, 128))


def _resident_spec(shape):
    """Grid-invariant operand: constant index_map + single buffering (no wasted
    second VMEM copy for blocks whose index never changes)."""
    return pl.BlockSpec(shape, lambda i: (0,) * len(shape),
                        pipeline_mode=pl.Buffered(1))


# ----------------------------------------------------------------------------
# Kernels
# ----------------------------------------------------------------------------
def _stats_mask(ncols, valid_cols):
    """(1, ncols) mask: True where this tile's column is a real (un-padded) point."""
    col = lax.broadcasted_iota(jnp.int32, (1, ncols), 1) + pl.program_id(0) * ncols
    return col < valid_cols


def _partial_stats(z, valid_cols):
    """Per-channel (sum, sum-of-squares) of this tile, packed as (C, 2), fp32."""
    if valid_cols is not None:
        z = jnp.where(_stats_mask(z.shape[1], valid_cols), z, 0.0)
    ssum = jnp.sum(z, axis=1, keepdims=True)
    ssq = jnp.sum(z * z, axis=1, keepdims=True)
    lane = lax.broadcasted_iota(jnp.int32, (1, 2), 1)      # [[0, 1]]
    return jnp.where(lane == 0, ssum, ssq)                 # one (C,2) store


def first_layer_kernel(x_ref, lat_ref, w1_ref, y_ref, stats_ref, *, valid_cols=None):
    """y = W1 @ x + latent (conv1 bias dropped: cancelled by bn1); partial BN stats.

    K = input_dim is tiny (3): the contraction is 3 VPU broadcast FMAs in fp32
    instead of a ~2%-utilized MXU matmul.  Stats are computed on the fp32 value
    before the (possibly bf16) HBM store."""
    x = x_ref[...]                                   # (Cin, TP) fp32
    w1 = w1_ref[...]                                 # (Cbn, Cin) fp32
    y = lat_ref[...].astype(jnp.float32)             # (Cbn, TP)
    for c in range(x_ref.shape[0]):
        y = y + w1[:, c:c + 1] * x[c:c + 1, :]
    y_ref[...] = y.astype(y_ref.dtype)
    stats_ref[...] = _partial_stats(y, valid_cols)


def mid_layer_kernel(scale_ref, shift_ref, y_ref, w_ref, out_ref, stats_ref, *,
                     valid_cols=None):
    """h = relu(y*scale + shift)   [previous layer's BN, fused, fp32 on the VPU];
    z = W @ h on the MXU (operands in w_ref.dtype, fp32 accumulate);
    partial BN stats of the fp32 z before the (possibly bf16) store."""
    y = y_ref[...].astype(jnp.float32)
    h = jnp.maximum(y * scale_ref[...] + shift_ref[...], 0.0)
    z = jnp.dot(w_ref[...], h.astype(w_ref.dtype), preferred_element_type=jnp.float32)
    out_ref[...] = z.astype(out_ref.dtype)
    stats_ref[...] = _partial_stats(z, valid_cols)


def last_layer_kernel(scale_ref, shift_ref, y_ref, w_ref, b_ref, out_ref):
    """h = relu(y*scale + shift); out = W_last @ h + b_last (lane-dense fp32 store)."""
    y = y_ref[...].astype(jnp.float32)
    h = jnp.maximum(y * scale_ref[...] + shift_ref[...], 0.0)
    z = jnp.dot(w_ref[...], h.astype(w_ref.dtype), preferred_element_type=jnp.float32)
    out_ref[...] = z + b_ref[...]


# ----------------------------------------------------------------------------
# pallas_call wrappers (grid over point tiles)
# ----------------------------------------------------------------------------
def _layer_first(x2, lat2, w1, tile_p, act_dtype, vmem_limit, valid_cols):
    cin, p = x2.shape
    cbn = w1.shape[0]
    nt = p // tile_p
    kernel = functools.partial(first_layer_kernel, valid_cols=valid_cols)
    return pl.pallas_call(
        kernel,
        out_shape=(jax.ShapeDtypeStruct((cbn, p), act_dtype),
                   jax.ShapeDtypeStruct((nt, cbn, 2), jnp.float32)),
        grid_spec=pltpu.PrefetchScalarGridSpec(
            num_scalar_prefetch=0,
            grid=(nt,),
            in_specs=[
                pl.BlockSpec((cin, tile_p), lambda i: (0, i)),
                pl.BlockSpec((cbn, tile_p), lambda i: (0, i)),
                _resident_spec((cbn, cin)),
            ],
            out_specs=[
                pl.BlockSpec((cbn, tile_p), lambda i: (0, i)),
                pl.BlockSpec((None, cbn, 2), lambda i: (i, 0, 0)),
            ]),
        compiler_params=_compiler_params(vmem_limit),
    )(x2, lat2, w1)


def _layer_mid(scale, shift, y_prev, w, tile_p, act_dtype, vmem_limit, valid_cols):
    cprev, p = y_prev.shape
    cnext = w.shape[0]
    nt = p // tile_p
    kernel = functools.partial(mid_layer_kernel, valid_cols=valid_cols)
    return pl.pallas_call(
        kernel,
        out_shape=(jax.ShapeDtypeStruct((cnext, p), act_dtype),
                   jax.ShapeDtypeStruct((nt, cnext, 2), jnp.float32)),
        grid_spec=pltpu.PrefetchScalarGridSpec(
            num_scalar_prefetch=0,
            grid=(nt,),
            in_specs=[
                _resident_spec((cprev, 1)),                       # scale
                _resident_spec((cprev, 1)),                       # shift
                pl.BlockSpec((cprev, tile_p), lambda i: (0, i)),  # streaming act
                _resident_spec((cnext, cprev)),                   # weight
            ],
            out_specs=[
                pl.BlockSpec((cnext, tile_p), lambda i: (0, i)),
                pl.BlockSpec((None, cnext, 2), lambda i: (i, 0, 0)),
            ]),
        compiler_params=_compiler_params(vmem_limit),
    )(scale, shift, y_prev, w)


def _layer_last(scale, shift, y_prev, w, b, tile_p, vmem_limit):
    cprev, p = y_prev.shape
    cout = w.shape[0]
    nt = p // tile_p
    return pl.pallas_call(
        last_layer_kernel,
        out_shape=jax.ShapeDtypeStruct((cout, p), jnp.float32),
        grid_spec=pltpu.PrefetchScalarGridSpec(
            num_scalar_prefetch=0,
            grid=(nt,),
            in_specs=[
                _resident_spec((cprev, 1)),
                _resident_spec((cprev, 1)),
                pl.BlockSpec((cprev, tile_p), lambda i: (0, i)),
                _resident_spec((cout, cprev)),
                _resident_spec((cout, 1)),
            ],
            out_specs=pl.BlockSpec((cout, tile_p), lambda i: (0, i)),
        ),
        compiler_params=_compiler_params(vmem_limit),
    )(scale, shift, y_prev, w, b)


def _bn_scale_shift(partial_stats, gamma, beta, count, eps=_EPS):
    """Fold training-mode BatchNorm1d into one per-channel (scale, shift), fp32."""
    # TODO(synk): single-pass E[x^2]-E[x]^2 can lose precision for channels with
    # large means at very large B*N; switch to per-tile mean-shifted sums if needed.
    tot = jnp.sum(partial_stats, axis=0)                        # (C, 2)
    mu = tot[:, 0:1] / count
    var = jnp.maximum(tot[:, 1:2] / count - mu * mu, 0.0)       # biased variance
    scale = gamma * lax.rsqrt(var + eps)
    shift = beta - mu * scale
    return scale, shift


# ----------------------------------------------------------------------------
# Forward
# ----------------------------------------------------------------------------
def atlasnet_forward(x_ncw, latent_ncw, params, *, compute_dtype=jnp.bfloat16,
                     tile_p=None):
    """x_ncw: (B, input_dim, N); latent_ncw: (B, bottleneck, N) -> (B, out_dim, N).

    compute_dtype controls the HBM activation / latent storage dtype and the MXU
    matmul operand dtype (bf16 by default).  BN statistics, the BN+ReLU epilogue
    and the final output always stay fp32.  Pass jnp.float32 for a bit-accurate
    check against the fp32 reference."""
    b, cin, n = x_ncw.shape
    cbn = params["w1"].shape[0]
    cout = params["wlast"].shape[0]
    p = b * n

    vmem_limit = _vmem_limit_bytes()
    if tile_p is None:
        tile_p = _pick_tile_p(p, compute_dtype, vmem_limit)
    assert tile_p % 128 == 0, "point tile must be a multiple of the 128-lane width"

    p_pad = _round_up(p, tile_p)
    valid_cols = None if p_pad == p else p    # static: masked stats only when padded
    count = jnp.float32(p)                    # BN normalizes by the true point count

    # NCW -> (C, B*N): keep the big point axis on lanes for every layer and the
    # output.  Latent goes to HBM in compute_dtype (layer 1 is HBM-bound on it).
    x2 = jnp.transpose(x_ncw, (1, 0, 2)).reshape(cin, p).astype(jnp.float32)
    lat2 = jnp.transpose(latent_ncw, (1, 0, 2)).reshape(cbn, p).astype(compute_dtype)
    if p_pad != p:
        x2 = jnp.pad(x2, ((0, 0), (0, p_pad - p)))
        lat2 = jnp.pad(lat2, ((0, 0), (0, p_pad - p)))

    # MXU weights in compute_dtype (bf16-native MXU on all gens); w1 stays fp32
    # (layer 1 runs on the VPU); last bias added post-matmul in fp32.
    w1 = params["w1"].astype(jnp.float32)
    w2 = params["w2"].astype(compute_dtype)
    wl0 = params["wl0"].astype(compute_dtype)
    wl1 = params["wl1"].astype(compute_dtype)
    wlast = params["wlast"].astype(compute_dtype)
    blast = params["blast"].astype(jnp.float32)

    # layer 1: conv1 + latent (conv1 bias dropped: cancelled by bn1)
    y1, st1 = _layer_first(x2, lat2, w1, tile_p, compute_dtype, vmem_limit, valid_cols)
    s1, t1 = _bn_scale_shift(st1, params["g1"], params["be1"], count)

    # conv2 with bn1+relu fused into its prologue
    y2, st2 = _layer_mid(s1, t1, y1, w2, tile_p, compute_dtype, vmem_limit, valid_cols)
    s2, t2 = _bn_scale_shift(st2, params["g2"], params["be2"], count)

    # conv_list[0]
    y3, st3 = _layer_mid(s2, t2, y2, wl0, tile_p, compute_dtype, vmem_limit, valid_cols)
    s3, t3 = _bn_scale_shift(st3, params["gl0"], params["bel0"], count)

    # conv_list[1]
    y4, st4 = _layer_mid(s3, t3, y3, wl1, tile_p, compute_dtype, vmem_limit, valid_cols)
    s4, t4 = _bn_scale_shift(st4, params["gl1"], params["bel1"], count)

    # last_conv (with its bias), lane-dense fp32 (cout, B*N) output
    out2 = _layer_last(s4, t4, y4, wlast, blast, tile_p, vmem_limit)

    out2 = out2[:, :p]
    return jnp.transpose(out2.reshape(cout, b, n), (1, 0, 2))


# ----------------------------------------------------------------------------
# Params + pure-JAX reference (PyTorch semantics, all biases, two-pass BN, fp32)
# ----------------------------------------------------------------------------
def make_params(key, input_dim, output_dim, bottleneck, hidden):
    """Deterministic synthetic params. Conv weights stored (Cout, Cin) like PyTorch."""
    ks = jax.random.split(key, 18)

    def w(k, cout, cin):
        return (jax.random.normal(k, (cout, cin), jnp.float32)
                / jnp.sqrt(cin)).astype(jnp.float32)

    def vec(k, c, scale=0.1, base=0.0):
        return (base + scale * jax.random.normal(k, (c, 1), jnp.float32)
                ).astype(jnp.float32)

    prm = {}
    prm["w1"], prm["b1"] = w(ks[0], bottleneck, input_dim), vec(ks[1], bottleneck)
    prm["g1"], prm["be1"] = vec(ks[2], bottleneck, base=1.0), vec(ks[3], bottleneck)
    prm["w2"], prm["b2"] = w(ks[4], hidden, bottleneck), vec(ks[5], hidden)
    prm["g2"], prm["be2"] = vec(ks[6], hidden, base=1.0), vec(ks[7], hidden)
    prm["wl0"], prm["bl0"] = w(ks[8], hidden, hidden), vec(ks[9], hidden)
    prm["gl0"], prm["bel0"] = vec(ks[10], hidden, base=1.0), vec(ks[11], hidden)
    prm["wl1"], prm["bl1"] = w(ks[12], hidden, hidden), vec(ks[13], hidden)
    prm["gl1"], prm["bel1"] = vec(ks[14], hidden, base=1.0), vec(ks[15], hidden)
    prm["wlast"], prm["blast"] = w(ks[16], output_dim, hidden), vec(ks[17], output_dim)
    return prm


def reference_forward(x_ncw, latent_ncw, prm):
    eps = _EPS
    b, cin, n = x_ncw.shape
    p = b * n
    x = jnp.transpose(x_ncw, (1, 0, 2)).reshape(cin, p)
    lat = jnp.transpose(latent_ncw, (1, 0, 2)).reshape(-1, p)

    def conv(h, w, bias):
        return w @ h + bias

    def bn_relu(h, g, be):
        mu = jnp.mean(h, axis=1, keepdims=True)
        var = jnp.mean((h - mu) ** 2, axis=1, keepdims=True)  # biased (train mode)
        return jnp.maximum((h - mu) / jnp.sqrt(var + eps) * g + be, 0.0)

    h = conv(x, prm["w1"], prm["b1"]) + lat
    h = bn_relu(h, prm["g1"], prm["be1"])
    h = bn_relu(conv(h, prm["w2"], prm["b2"]), prm["g2"], prm["be2"])
    h = bn_relu(conv(h, prm["wl0"], prm["bl0"]), prm["gl0"], prm["bel0"])
    h = bn_relu(conv(h, prm["wl1"], prm["bl1"]), prm["gl1"], prm["bel1"])
    h = conv(h, prm["wlast"], prm["blast"])
    return jnp.transpose(h.reshape(-1, b, n), (1, 0, 2))


if __name__ == "__main__":
    # Small, forward-consistent shapes (scaled-down bottleneck/hidden).
    B, N = 2, 128
    INPUT_DIM, OUTPUT_DIM = 3, 3
    BOTTLENECK, HIDDEN = 64, 32

    key = jax.random.PRNGKey(0)
    kx, klat, kp = jax.random.split(key, 3)
    x = jax.random.normal(kx, (B, INPUT_DIM, N), jnp.float32)          # NCW like PyTorch
    latent = jax.random.normal(klat, (B, BOTTLENECK, N), jnp.float32)  # added after conv1
    params = make_params(kp, INPUT_DIM, OUTPUT_DIM, BOTTLENECK, HIDDEN)

    ref = reference_forward(x, latent, params)

    # 1) fp32 path with a multi-tile grid (tile_p=128): bit-accurate check of the
    #    kernel semantics (tiled BN, fused scale/shift, folded conv biases).
    out_f32 = jax.block_until_ready(
        atlasnet_forward(x, latent, params, compute_dtype=jnp.float32, tile_p=128))
    assert out_f32.shape == (B, OUTPUT_DIM, N)
    err = float(jnp.max(jnp.abs(out_f32 - ref)))
    assert err < 1e-3, f"fp32 path mismatch vs reference: max abs err {err}"

    # 2) fp32 path with a ragged point count (B*N=200 padded to 256): exercises
    #    the padded / masked-statistics path with the true BN count.
    N2 = 100
    x_r, lat_r = x[:, :, :N2], latent[:, :, :N2]
    ref_r = reference_forward(x_r, lat_r, params)
    out_r = jax.block_until_ready(
        atlasnet_forward(x_r, lat_r, params, compute_dtype=jnp.float32, tile_p=128))
    err_r = float(jnp.max(jnp.abs(out_r - ref_r)))
    assert err_r < 1e-3, f"padded path mismatch vs reference: max abs err {err_r}"

    # 3) default bf16 fast path (bf16 HBM activations + bf16 MXU operands, fp32
    #    stats / epilogue): loose relative sanity check against the fp32 reference
    #    (exact semantics are validated by the fp32 checks above).
    out_bf = jax.block_until_ready(atlasnet_forward(x, latent, params))
    rel = float(jnp.max(jnp.abs(out_bf - ref)) / (jnp.max(jnp.abs(ref)) + 1e-6))
    assert rel < 1e-1, f"bf16 path too far from fp32 reference: rel err {rel}"

    print("KERNEL_OK")
</pallas_src>

<mosaic_0001>
module attributes {stable_mosaic.version = 11 : i64} {
  func.func @first_layer_kernel(%arg0: i32, %arg1: memref<3x128xf32, #tpu.memory_space<vmem>>, %arg2: memref<64x128xf32, #tpu.memory_space<vmem>>, %arg3: memref<64x3xf32, #tpu.memory_space<vmem>>, %arg4: memref<64x128xf32, #tpu.memory_space<vmem>>, %arg5: memref<1x64x2xf32, #tpu.memory_space<vmem>>) attributes {dimension_semantics = [#tpu.dimension_semantics<parallel>], iteration_bounds = array<i64: 2>, scalar_prefetch = 0 : i64, scratch_operands = 0 : i64, tpu.core_type = #tpu.core_type<tc>, window_params = [{transform_indices = @transform_0, window_bounds = array<i64: 3, 128>}, {transform_indices = @transform_1, window_bounds = array<i64: 64, 128>}, {pipeline_mode = #tpu.pipeline_mode<synchronous>, transform_indices = @transform_2, window_bounds = array<i64: 64, 3>}, {transform_indices = @transform_3, window_bounds = array<i64: 64, 128>}, {transform_indices = @transform_4, window_bounds = array<i64: 1, 64, 2>}]} {
    %c0 = arith.constant 0 : index
    %c0_0 = arith.constant 0 : index
    %0 = vector.load %arg1[%c0, %c0_0] : memref<3x128xf32, #tpu.memory_space<vmem>>, vector<3x128xf32>
    %c0_1 = arith.constant 0 : index
    %c0_2 = arith.constant 0 : index
    %1 = vector.load %arg3[%c0_1, %c0_2] : memref<64x3xf32, #tpu.memory_space<vmem>>, vector<64x3xf32>
    %c0_3 = arith.constant 0 : index
    %c0_4 = arith.constant 0 : index
    %2 = vector.load %arg2[%c0_3, %c0_4] : memref<64x128xf32, #tpu.memory_space<vmem>>, vector<64x128xf32>
    %3 = vector.extract_strided_slice %1 {offsets = [0, 0], sizes = [64, 1], strides = [1, 1]} : vector<64x3xf32> to vector<64x1xf32>
    %4 = vector.extract_strided_slice %0 {offsets = [0, 0], sizes = [1, 128], strides = [1, 1]} : vector<3x128xf32> to vector<1x128xf32>
    %5 = vector.broadcast %3 : vector<64x1xf32> to vector<64x128xf32>
    %6 = vector.broadcast %4 : vector<1x128xf32> to vector<64x128xf32>
    %7 = arith.mulf %5, %6 : vector<64x128xf32>
    %8 = arith.addf %2, %7 : vector<64x128xf32>
    %9 = vector.extract_strided_slice %1 {offsets = [0, 1], sizes = [64, 1], strides = [1, 1]} : vector<64x3xf32> to vector<64x1xf32>
    %10 = vector.extract_strided_slice %0 {offsets = [1, 0], sizes = [1, 128], strides = [1, 1]} : vector<3x128xf32> to vector<1x128xf32>
    %11 = vector.broadcast %9 : vector<64x1xf32> to vector<64x128xf32>
    %12 = vector.broadcast %10 : vector<1x128xf32> to vector<64x128xf32>
    %13 = arith.mulf %11, %12 : vector<64x128xf32>
    %14 = arith.addf %8, %13 : vector<64x128xf32>
    %15 = vector.extract_strided_slice %1 {offsets = [0, 2], sizes = [64, 1], strides = [1, 1]} : vector<64x3xf32> to vector<64x1xf32>
    %16 = vector.extract_strided_slice %0 {offsets = [2, 0], sizes = [1, 128], strides = [1, 1]} : vector<3x128xf32> to vector<1x128xf32>
    %17 = vector.broadcast %15 : vector<64x1xf32> to vector<64x128xf32>
    %18 = vector.broadcast %16 : vector<1x128xf32> to vector<64x128xf32>
    %19 = arith.mulf %17, %18 : vector<64x128xf32>
    %20 = arith.addf %14, %19 : vector<64x128xf32>
    %c0_5 = arith.constant 0 : index
    %c0_6 = arith.constant 0 : index
    %21 = vector.load %arg4[%c0_5, %c0_6] : memref<64x128xf32, #tpu.memory_space<vmem>>, vector<64x128xf32>
    tpu.vector_store %arg4[%c0_5, %c0_6], %20 {strides = array<i32>} : memref<64x128xf32, #tpu.memory_space<vmem>>, vector<64x128xf32>,
    %cst = arith.constant dense<0.000000e+00> : vector<64xf32>
    %22 = vector.multi_reduction <add>, %20, %cst [1] : vector<64x128xf32> to vector<64xf32>
    %23 = vector.shape_cast %22 : vector<64xf32> to vector<64x1xf32>
    %24 = arith.mulf %20, %20 : vector<64x128xf32>
    %cst_7 = arith.constant dense<0.000000e+00> : vector<64xf32>
    %25 = vector.multi_reduction <add>, %24, %cst_7 [1] : vector<64x128xf32> to vector<64xf32>
    %26 = vector.shape_cast %25 : vector<64xf32> to vector<64x1xf32>
    %27 = tpu.iota {dimensions = array<i32: 1>} : vector<1x2xi32>
    %c0_i32 = arith.constant 0 : i32
    %28 = vector.broadcast %c0_i32 : i32 to vector<1x2xi32>
    %29 = arith.cmpi eq, %27, %28 : vector<1x2xi32>
    %30 = vector.shape_cast %29 : vector<1x2xi1> to vector<1x2xi1>
    %31 = vector.broadcast %30 : vector<1x2xi1> to vector<64x2xi1>
    %32 = vector.shape_cast %23 : vector<64x1xf32> to vector<64x1xf32>
    %33 = vector.broadcast %32 : vector<64x1xf32> to vector<64x2xf32>
    %34 = vector.shape_cast %26 : vector<64x1xf32> to vector<64x1xf32>
    %35 = vector.broadcast %34 : vector<64x1xf32> to vector<64x2xf32>
    %36 = arith.select %31, %33, %35 : vector<64x2xi1>, vector<64x2xf32>
    %c0_8 = arith.constant 0 : index
    %c0_9 = arith.constant 0 : index
    %c0_10 = arith.constant 0 : index
    %37 = vector.load %arg5[%c0_8, %c0_9, %c0_10] : memref<1x64x2xf32, #tpu.memory_space<vmem>>, vector<1x64x2xf32>
    %38 = vector.shape_cast %37 : vector<1x64x2xf32> to vector<64x2xf32>
    %39 = vector.shape_cast %36 : vector<64x2xf32> to vector<1x64x2xf32>
    tpu.vector_store %arg5[%c0_8, %c0_9, %c0_10], %39 {strides = array<i32>} : memref<1x64x2xf32, #tpu.memory_space<vmem>>, vector<1x64x2xf32>,
    return
  }
  func.func @transform_0(%arg0: i32) -> (i32, i32) {
    %c0_i32 = arith.constant 0 : i32
    %c0_i32_0 = arith.constant 0 : i32
    return %c0_i32, %arg0 : i32, i32
  }
  func.func @transform_1(%arg0: i32) -> (i32, i32) {
    %c0_i32 = arith.constant 0 : i32
    %c0_i32_0 = arith.constant 0 : i32
    return %c0_i32, %arg0 : i32, i32
  }
  func.func @transform_2(%arg0: i32) -> (i32, i32) {
    %c0_i32 = arith.constant 0 : i32
    %c0_i32_0 = arith.constant 0 : i32
    %c0_i32_1 = arith.constant 0 : i32
    return %c0_i32, %c0_i32_0 : i32, i32
  }
  func.func @transform_3(%arg0: i32) -> (i32, i32) {
    %c0_i32 = arith.constant 0 : i32
    %c0_i32_0 = arith.constant 0 : i32
    return %c0_i32, %arg0 : i32, i32
  }
  func.func @transform_4(%arg0: i32) -> (i32, i32, i32) {
    %c0_i32 = arith.constant 0 : i32
    %c0_i32_0 = arith.constant 0 : i32
    %c0_i32_1 = arith.constant 0 : i32
    return %arg0, %c0_i32, %c0_i32_0 : i32, i32, i32
  }
}

</mosaic_0001>

<bundles_post_ra>
// kernel: tpu_custom_call.1
= control target key start
LH: loop header
LB: loop body
LE: loop exit
PB: predicated region body
PF: predicated region fallthrough
CT: control target
= control target key end

     0   :  { %10 = vsyncpa [#allocation3], 0  ;;  %s1120_s0 = inlined_call_operand.vmem [shape: f32[3,256], index: 0, kind: input, shape index: {}]   ;;  %s1121_s1 = inlined_call_operand.hbm [shape: f32[64,256], index: 1, kind: input, shape index: {}]   ;;  %s1122_s2 = inlined_call_operand.vmem [shape: f32[64,3], index: 2, kind: input, shape index: {}]   ;;  %s1123_s3 = inlined_call_operand.hbm [shape: f32[64,256], index: 3, kind: output, shape index: {0}]   ;;  %s1124_s4 = inlined_call_operand.vmem [shape: f32[2,64,2], index: 4, kind: output, shape index: {1}]  }
   0x1   :  { %12 = vsyncpa [#allocation3 + $0x1], 0 }
   0x2   :  { %13 = vsyncpa [#allocation4], 0 }
   0x3   :  { %15 = vsyncpa [#allocation4 + $0x1], 0  ;;  %s838_s15 = smov 0   ;;  %s840_s16 = smov 0  }
   0x4   :  { %s842_s17 = smov 0   ;;  %s844_s18 = smov 0  }
   0x5 LB: > { %s859_s19 = sadd.s32 4294967295, %s800_s18   ;;  %s627_s20 = sadd.s32 4294967294, %s800_s18   ;;  %s800_s18 = sphi %s844_s18, %s1138_s18   ;;  %s796_s17 = sphi %s842_s17, %s1137_s17   ;;  %s792_s16 = sphi %s840_s16, %s1136_s16   ;;  %s788_s15 = sphi %s838_s15, %s1135_s15  }
   0x6   : > { %s863_s21 = sadd.s32 1, %s800_s18   ;;  %s54_s22 = sadd.s32 1, %s796_s17 }
   0x7   : > { %s51_s23 = ssub.s32 %s800_s18, %s863_s21  ;;  %p61_p0 = scmp.ne.s32.totalorder %s796_s17, %s792_s16 }
   0x8   : > { %p52_p1 = scmp.eq.s32.totalorder %s51_s23, 0  ;;  %p62_p2 = scmp.eq.s32.totalorder %s800_s18, 0 }
   0x9   : > { %p67_p3 = scmp.ne.s32.totalorder %s792_s16, %s788_s15  ;;  %p68_p4 = scmp.eq.s32.totalorder %s859_s19, 0 }
   0xa   : > { %s875_s24 = scalar_select %p52_p1, %s796_s17, %s54_s22  }
   0xb   : > { %p877_p5 = por %p62_p2, %p61_p0  ;;  %p881_p6 = por %p68_p4, %p67_p3 }
   0xc   : > { %p112_p7 = scmp.eq.s32.totalorder %s859_s19, 1  ;;  %p118_p8 = scmp.eq.s32.totalorder %s627_s20, 1 }
   0xd   : > { %p655_p10 = scmp.lt.s32.totalorder %s800_s18, 2  ;;  %s174_s29 = sand.u32 1, %s796_s17  }
   0xe   : > { %p888_p11 = por %p112_p7, %p61_p0  ;;  %p892_p12 = por %p118_p8, %p67_p3 }
   0xf   : > { %s631_s30 = sshll.u32 %s800_s18, 7  ;;  %s630_s5 = sshll.u32 %s174_s29, 6 }
  0x10   : > { %s1128_s27 = scalar_select %p888_p11, 1, 0 }
  0x11   : > { %s1129_s28 = scalar_select %p892_p12, 1, 0 }
  0x12   : > { %s901_s8 = scalar_lea.hbm %s1121_s1, %s631_s30  ;;  %s178_s9 = scalar_lea.vmem [#allocation2], %s630_s5 }
  0x13   : > { %s184_s10 = sshll.u32 %s178_s9, 4  ;;  %p905_p13 = pnand %p655_p10, %p877_p5  ;;  %s909_s10 = int_to_ptr.vmem [resolvable:$true] %s184_s10 }
  0x14   : > { %s912_s12 = scalar_lea.sflag [#allocation3], %s174_s29  ;;  %s704_s13 = scalar_lea.hbm %s901_s8, 1024 }
  0x15   : > { %p705_p1 = scmp.ne.s32.totalorder %s901_s8, %s704_s13  ;;  %p706_p2 = pneg %p905_p13 }
  0x16   : > { %s709_s22 = scalar_lea.hbm %s1121_s1, 2048  ;;  %p710_p5 = scmp.lt.u32.totalorder %s901_s8, %s1121_s1 }
  0x17   : > { %p707_p3 = pnand %p706_p2, %p705_p1  ;;  %p711_p7 = scmp.lt.u32.totalorder %s709_s22, %s704_s13 }
  0x18   : > { %p713_p10 = scmp.lt.u32.totalorder %s704_s13, %s901_s8 }
  0x19   : > { %p708_p4 = pneg %p707_p3  ;;  %p712_p8 = por %p711_p7, %p710_p5 }
  0x1b   : > { %p714_p9 = por %p713_p10, %p712_p8 }
  0x1d   : > { %p715_p0 = pnand %p714_p9, %p708_p4 }
  0x1f   : > { %718 = shalt.err (!%p715_p0)
}
  0x20   : > { %s719_s29 = scalar_lea.vmem %s909_s10, 1024  ;;  %s802_s30 = smov [#allocation2]  }
  0x21   : > { %p720_p1 = scmp.ne.s32.totalorder %s909_s10, %s719_s29  ;;  %s724_s5 = sshll.u32 %s802_s30, 4  ;;  %s725_s5 = int_to_ptr.vmem [resolvable:$false] %s724_s5 }
  0x22   : > { %s726_s6 = scalar_lea.vmem %s725_s5, 2048  ;;  %p727_p11 = scmp.lt.s32.totalorder %s909_s10, %s725_s5 }
  0x23   : > { %p722_p3 = pnand %p720_p1, %p706_p2  ;;  %p728_p5 = scmp.lt.s32.totalorder %s726_s6, %s719_s29 }
  0x25   : > { %p723_p12 = pneg %p722_p3  ;;  %p729_p7 = por %p728_p5, %p727_p11 }
  0x27   : > { %p730_p8 = pnand %p729_p7, %p723_p12 }
  0x29   : > { %733 = shalt.err (!%p730_p8)
}
  0x2a   : > { %s803_s7 = smov 256   ;;  %s804_s9 = smov 128  }
  0x2b   : > { %s805_s13 = smov 8   ;;  %p192_p9 = scmp.lt.s32.totalorder %s800_s18, 3 }
  0x2c   : > { %650 = dma.hbm_to_vmem [thread:$0]  (!%p905_p13), %s901_s8, 1024, %s909_s10, %s912_s12, %s803_s7, %s804_s9, %s805_s13  }
  0x2d   : > { %p1131_p0 = scmp.ge.s32.totalorder %s800_s18, 1 }
  0x2f   : > { %p193_p2 = pnand %p1131_p0, %p192_p9 }
  0x30   : > { %s944_s14 = sand.u32 (!%p193_p2), 1, %s792_s16  }
  0x31   : > { %196 = sbr.rel (%p193_p2) target bundleno = 401 (0x191), region = 32  ;;  %s633_s20 = sshll.u32 (!%p193_p2), %s944_s14, 6 }
  0x32   : > { %s199_s22 = scalar_lea.sflag (!%p193_p2), [#allocation3], %s944_s14  ;;  %s950_s23 = scalar_lea.vmem (!%p193_p2), [#allocation2], %s633_s20 }
  0x38   : > { %779 = dma.done.wait (%p881_p6), %s199_s22, 1024  }
  0x39   : > { %781 = vsyncadd (%p881_p6), %s199_s22, 4294966272  ;;  %v806_v0 = vmov 0   ;;  %v248_v1 = vld [vmem:[%s1122_s2 + $0x10] sm:$0xff]  ;;  %v246_v2 = vld [vmem:[%s1122_s2] sm:$0xff]  ;;  %v807_v9 = vmov 1   ;;  %v808_v10 = vmov 2   ;;  %v302_v19 = vlaneseq }
  0x3a   : > { %699 = vset.pattern.permute.xlu1 %v806_v0  ;;  %698 = vset.pattern.permute.xlu0 %v806_v0  ;;  %v249_v3 = vld [vmem:[%s1122_s2 + $0x18] sm:$0xff]  ;;  %v247_v4 = vld [vmem:[%s1122_s2 + $0x8] sm:$0xff]  ;;  %v250_v6 = vld [vmem:[%s1122_s2 + $0x20] sm:$0xff]  ;;  %p236_p6 = scmp.lt.s32.totalorder %s859_s19, 1  ;;  %s1023_s26 = scalar_lea.vmem [#allocation5], %s633_s20 }
  0x3b   : > { %274 = vperm.xlu1 %699, %v248_v1   ;;  %264 = vperm.xlu0 %698, %v246_v2   ;;  %v251_v5 = vld [vmem:[%s1122_s2 + $0x28] sm:$0xff]  ;;  %v253_v7 = vld [vmem:[%s1122_s2 + $0x38] sm:$0xff]  ;;  %v252_v8 = vld [vmem:[%s1122_s2 + $0x30] sm:$0xff]  ;;  %v303_v22 = vshrl.u32 %v302_v19, 7  ;;  %s514_s20 = sshll.u32 %s1023_s26, 4  ;;  %s497_s9 = scalar_lea.sflag [#allocation4], %s944_s14  ;;  %s1049_s20 = int_to_ptr.vmem [resolvable:$true] %s514_s20 }
  0x3c   : > { %s986_s11 = scalar_select %p236_p6, %s859_s19, 1  ;;  %v254_v37 = vld [vmem:[%s950_s23] sm:$0xff]  ;;  %v255_v38 = vld [vmem:[%s950_s23 + $0x8] sm:$0xff]  ;;  %v256_v44 = vld [vmem:[%s950_s23 + $0x10] sm:$0xff] }
  0x3d   : > { %v304_v25 = vsub.s32 0, %v303_v22  ;;  %v356_v26 = vsub.s32 1, %v303_v22  ;;  %v408_v32 = vsub.s32 2, %v303_v22  ;;  %v258_v47 = vld [vmem:[%s950_s23 + $0x20] sm:$0xff]  ;;  %v257_v59 = vld [vmem:[%s950_s23 + $0x18] sm:$0xff]  ;;  %v260_v63 = vld [vmem:[%s950_s23 + $0x30] sm:$0xff] }
  0x3e   : > { %s635_s12 = sshll.u32 %s986_s11, 2  ;;  %s734_s13 = scalar_lea.vmem %s1049_s20, 1024 }
  0x3f   : > { %279 = vperm.xlu1 %699, %v249_v3   ;;  %269 = vperm.xlu0 %698, %v247_v4   ;;  %s239_s30 = scalar_lea.vmem %s1120_s0, %s635_s12  ;;  %p735_p11 = scmp.ne.s32.totalorder %s1049_s20, %s734_s13 }
  0x40   : > { %v245_v27 = vld [vmem:[%s239_s30] sm:$0x7]  ;;  %p1132_p12 = scmp.ne.s32.totalorder %s1128_s27, 0  ;;  %s809_s22 = smov [#allocation5]  }
  0x41   : > { %v993_v30 = vrot.slane %v245_v27, %v304_v25  ;;  %v995_v31 = vrot.slane %v245_v27, %v356_v26  ;;  %v1005_v41 = vrot.slane %v245_v27, %v408_v32  ;;  %v261_v27 = vld [vmem:[%s950_s23 + $0x38] sm:$0xff]  ;;  %s738_s8 = sshll.u32 %s809_s22, 4  ;;  %s739_s8 = int_to_ptr.vmem [resolvable:$false] %s738_s8 }
  0x42   : > { %p736_p13 = pnand %p735_p11, %p1132_p12  ;;  %s740_s10 = scalar_lea.vmem %s739_s8, 2048 }
  0x43   : > { %289 = vperm.xlu1 %699, %v251_v5   ;;  %284 = vperm.xlu0 %698, %v250_v6   ;;  %p741_p10 = scmp.lt.s32.totalorder %s1049_s20, %s739_s8  ;;  %p742_p1 = scmp.lt.s32.totalorder %s740_s10, %s734_s13 }
  0x44   : > { %p737_p4 = pneg %p736_p13 }
  0x45   : > { %p743_p3 = por %p742_p1, %p741_p10 }
  0x47   : > { %299 = vperm.xlu1 %699, %v253_v7   ;;  %294 = vperm.xlu0 %698, %v252_v8   ;;  %p744_p5 = pnand %p743_p3, %p737_p4 }
  0x4b   : > { %701 = vset.pattern.permute.xlu1 %v807_v9  ;;  %700 = vset.pattern.permute.xlu0 %v807_v9 }
  0x4c   : > { %327 = vperm.xlu1 %701, %v247_v4   ;;  %323 = vperm.xlu0 %700, %v246_v2  }
  0x50   : > { %331 = vperm.xlu1 %701, %v248_v1   ;;  %335 = vperm.xlu0 %700, %v249_v3  }
  0x54   : > { %339 = vperm.xlu1 %701, %v250_v6   ;;  %343 = vperm.xlu0 %700, %v251_v5  }
  0x58   : > { %347 = vperm.xlu1 %701, %v252_v8   ;;  %351 = vperm.xlu0 %700, %v253_v7  }
  0x5c   : > { %702 = vset.pattern.permute.xlu1 %v808_v10  ;;  %703 = vset.pattern.permute.xlu0 %v808_v10 }
  0x5d   : > { %375 = vperm.xlu1 %702, %v246_v2   ;;  %379 = vperm.xlu0 %703, %v247_v4  }
  0x61   : > { %383 = vperm.xlu1 %702, %v248_v1   ;;  %391 = vperm.xlu0 %703, %v250_v6  }
  0x65   : > { %387 = vperm.xlu1 %702, %v249_v3   ;;  %399 = vperm.xlu0 %703, %v252_v8  }
  0x69   : > { %395 = vperm.xlu1 %702, %v251_v5  }
  0x6d   : > { %403 = vperm.xlu1 %702, %v253_v7  }
  0xba   : > { %v275_v11 = vpop.permute.xlu1 %274  ;;  %v265_v12 = vpop.permute.xlu0 %264 }
  0xbb   : > { %v306_v33 = vmul.f32 %v993_v30, %v265_v12  ;;  %v308_v42 = vmul.f32 %v993_v30, %v275_v11 }
  0xbd   : > { %v314_v45 = vadd.f32 %v306_v33, %v254_v37  ;;  %v316_v56 = vadd.f32 %v308_v42, %v256_v44 }
  0xbe   : > { %v280_v13 = vpop.permute.xlu1 %279  ;;  %v270_v14 = vpop.permute.xlu0 %269 }
  0xbf   : > { %v307_v34 = vmul.f32 %v993_v30, %v270_v14  ;;  %v309_v57 = vmul.f32 %v993_v30, %v280_v13  ;;  %v259_v13 = vld [vmem:[%s950_s23 + $0x28] sm:$0xff]  ;;  %s639_s23 = sshll.u32 %s859_s19, 7 }
  0xc0   : > { %s1055_s7 = scalar_lea.hbm %s1123_s3, %s639_s23 }
  0xc1   : > { %v315_v46 = vadd.f32 %v307_v34, %v255_v38  ;;  %v317_v8 = vadd.f32 %v309_v57, %v257_v59 }
  0xc2   : > { %v980_v15 = vpop.permute.xlu1 %289  ;;  %v285_v16 = vpop.permute.xlu0 %284 }
  0xc3   : > { %v310_v43 = vmul.f32 %v993_v30, %v285_v16  ;;  %v311_v9 = vmul.f32 %v993_v30, %v980_v15 }
  0xc5   : > { %v318_v58 = vadd.f32 %v310_v43, %v258_v47  ;;  %v319_v15 = vadd.f32 %v311_v9, %v259_v13 }
  0xc6   : > { %v983_v17 = vpop.permute.xlu1 %299  ;;  %v295_v18 = vpop.permute.xlu0 %294 }
  0xc7   : > { %v312_v60 = vmul.f32 %v993_v30, %v295_v18 }
  0xc9   : > { %v320_v10 = vadd.f32 %v312_v60, %v260_v63 }
  0xcb   : > { %v328_v20 = vpop.permute.xlu1 %327  ;;  %v324_v21 = vpop.permute.xlu0 %323 }
  0xcc   : > { %v359_v39 = vmul.f32 %v995_v31, %v328_v20  ;;  %v358_v40 = vmul.f32 %v995_v31, %v324_v21 }
  0xce   : > { %v367_v52 = vadd.f32 %v359_v39, %v315_v46  ;;  %v366_v53 = vadd.f32 %v358_v40, %v314_v45 }
  0xcf   : > { %v332_v23 = vpop.permute.xlu1 %331  ;;  %v336_v24 = vpop.permute.xlu0 %335 }
  0xd0   : > { %v360_v48 = vmul.f32 %v995_v31, %v332_v23  ;;  %v361_v1 = vmul.f32 %v995_v31, %v336_v24  ;;  %v313_v24 = vmul.f32 %v993_v30, %v983_v17 }
  0xd2   : > { %v368_v0 = vadd.f32 %v360_v48, %v316_v56  ;;  %v369_v14 = vadd.f32 %v361_v1, %v317_v8  ;;  %v321_v34 = vadd.f32 %v313_v24, %v261_v27 }
  0xd3   : > { %v340_v28 = vpop.permute.xlu1 %339  ;;  %v344_v29 = vpop.permute.xlu0 %343 }
  0xd4   : > { %v362_v49 = vmul.f32 %v995_v31, %v340_v28  ;;  %v363_v16 = vmul.f32 %v995_v31, %v344_v29 }
  0xd6   : > { %v370_v2 = vadd.f32 %v362_v49, %v318_v58  ;;  %v371_v29 = vadd.f32 %v363_v16, %v319_v15 }
  0xd7   : > { %v348_v35 = vpop.permute.xlu1 %347  ;;  %v999_v36 = vpop.permute.xlu0 %351 }
  0xd8   : > { %v364_v5 = vmul.f32 %v995_v31, %v348_v35  ;;  %v365_v32 = vmul.f32 %v995_v31, %v999_v36 }
  0xda   : > { %v372_v21 = vadd.f32 %v364_v5, %v320_v10  ;;  %v373_v30 = vadd.f32 %v365_v32, %v321_v34 }
  0xdc   : > { %v376_v50 = vpop.permute.xlu1 %375  ;;  %v380_v51 = vpop.permute.xlu0 %379 }
  0xdd   : > { %v410_v54 = vmul.f32 %v1005_v41, %v376_v50  ;;  %v411_v55 = vmul.f32 %v1005_v41, %v380_v51 }
  0xdf   : > { %v418_v61 = vadd.f32 %v410_v54, %v366_v53  ;;  %v419_v62 = vadd.f32 %v411_v55, %v367_v52 }
  0xe0   : > { %v384_v3 = vpop.permute.xlu1 %383  ;;  %v392_v4 = vpop.permute.xlu0 %391 }
  0xe1   : > { %426 = vst [vmem:[%s1023_s26] sm:$0xff] %v418_v61  ;;  %427 = vst [vmem:[%s1023_s26 + $0x8] sm:$0xff] %v419_v62  ;;  %v412_v6 = vmul.f32 %v1005_v41, %v384_v3  ;;  %v414_v7 = vmul.f32 %v1005_v41, %v392_v4  ;;  %436 = vadd.xlane.f32.xlu1 %v419_v62  ;;  %434 = vadd.xlane.f32.xlu0 %v418_v61 }
  0xe2   : > { %v450_v37 = vmul.f32 %v418_v61, %v418_v61  ;;  %v451_v31 = vmul.f32 %v419_v62, %v419_v62 }
  0xe3   : > { %v420_v11 = vadd.f32 %v412_v6, %v368_v0  ;;  %v422_v12 = vadd.f32 %v414_v7, %v370_v2 }
  0xe4   : > { %v388_v18 = vpop.permute.xlu1 %387  ;;  %v400_v20 = vpop.permute.xlu0 %399 }
  0xe5   : > { %428 = vst [vmem:[%s1023_s26 + $0x10] sm:$0xff] %v420_v11  ;;  %430 = vst [vmem:[%s1023_s26 + $0x20] sm:$0xff] %v422_v12  ;;  %v413_v22 = vmul.f32 %v1005_v41, %v388_v18  ;;  %v416_v23 = vmul.f32 %v1005_v41, %v400_v20  ;;  %442 = vadd.xlane.f32.xlu1 %v422_v12  ;;  %438 = vadd.xlane.f32.xlu0 %v420_v11 }
  0xe6   : > { %v452_v40 = vmul.f32 %v420_v11, %v420_v11  ;;  %v454_v36 = vmul.f32 %v422_v12, %v422_v12 }
  0xe7   : > { %v421_v25 = vadd.f32 %v413_v22, %v369_v14  ;;  %v424_v26 = vadd.f32 %v416_v23, %v372_v21 }
  0xe8   : > { %v396_v28 = vpop.permute.xlu1 %395 }
  0xe9   : > { %429 = vst [vmem:[%s1023_s26 + $0x18] sm:$0xff] %v421_v25  ;;  %432 = vst [vmem:[%s1023_s26 + $0x30] sm:$0xff] %v424_v26  ;;  %v415_v33 = vmul.f32 %v1005_v41, %v396_v28  ;;  %446 = vadd.xlane.f32.xlu1 %v424_v26  ;;  %440 = vadd.xlane.f32.xlu0 %v421_v25  ;;  %v453_v42 = vmul.f32 %v421_v25, %v421_v25 }
  0xea   : > { %v456_v43 = vmul.f32 %v424_v26, %v424_v26 }
  0xeb   : > { %v423_v35 = vadd.f32 %v415_v33, %v371_v29 }
  0xec   : > { %v404_v17 = vpop.permute.xlu1 %403 }
  0xed   : > { %431 = vst [vmem:[%s1023_s26 + $0x28] sm:$0xff] %v423_v35  ;;  %v417_v38 = vmul.f32 %v1005_v41, %v404_v17  ;;  %444 = vadd.xlane.f32.xlu0 %v423_v35  ;;  %458 = vadd.xlane.f32.xlu1 %v450_v37  ;;  %v455_v41 = vmul.f32 %v423_v35, %v423_v35 }
  0xef   : > { %v425_v39 = vadd.f32 %v417_v38, %v373_v30 }
  0xf1   : > { %433 = vst [vmem:[%s1023_s26 + $0x38] sm:$0xff] %v425_v39  ;;  %448 = vadd.xlane.f32.xlu0 %v425_v39  ;;  %462 = vadd.xlane.f32.xlu1 %v452_v40  ;;  %v457_v44 = vmul.f32 %v425_v39, %v425_v39 }
  0xf5   : > { %460 = vadd.xlane.f32.xlu0 %v451_v31  ;;  %466 = vadd.xlane.f32.xlu1 %v454_v36 }
  0xf9   : > { %464 = vadd.xlane.f32.xlu0 %v453_v42  ;;  %470 = vadd.xlane.f32.xlu1 %v456_v43 }
  0xfd   : > { %468 = vadd.xlane.f32.xlu0 %v455_v41 }
 0x101   : > { %472 = vadd.xlane.f32.xlu0 %v457_v44 }
 0x102   : > { %747 = shalt.err (!%p744_p5)
}
 0x103   : > { %s748_s19 = scalar_lea.hbm %s1055_s7, 1024  ;;  %s752_s29 = scalar_lea.hbm %s1123_s3, 2048 }
 0x104   : > { %p749_p7 = scmp.ne.s32.totalorder %s1055_s7, %s748_s19  ;;  %p753_p0 = scmp.lt.u32.totalorder %s1055_s7, %s1123_s3 }
 0x105   : > { %p754_p2 = scmp.lt.u32.totalorder %s752_s29, %s748_s19  ;;  %p756_p11 = scmp.lt.u32.totalorder %s748_s19, %s1055_s7 }
 0x106   : > { %p750_p8 = pnand %p749_p7, %p1132_p12 }
 0x107   : > { %p755_p6 = por %p754_p2, %p753_p0 }
 0x108   : > { %p751_p9 = pneg %p750_p8 }
 0x109   : > { %p757_p13 = por %p756_p11, %p755_p6 }
 0x10b   : > { %p758_p4 = pnand %p757_p13, %p751_p9 }
 0x10d   : > { %761 = shalt.err (!%p758_p4)
}
 0x10e   : > { %s810_s23 = smov 128   ;;  %s811_s5 = smov 256   ;;  %v475_v49 = vand.u32 127, %v302_v19  ;;  %vm487_vm1 = vcmask 15360  }
 0x10f   : > { %s812_s6 = smov 8   ;;  %s642_s13 = sshll.u32 %s986_s11, 6 }
 0x110   : > { %645 = dma.vmem_to_hbm [thread:$0]  (%p1132_p12), %s1049_s20, 1024, %s1055_s7, %s497_s9, %s810_s23, %s811_s5, %s812_s6   ;;  %vm476_vm0 = vcmp.eq.s32.totalorder %v475_v49, 0 }
 0x111   : > { %s244_s10 = scalar_lea.vmem %s1124_s4, %s642_s13 }
 0x16e   : > { %v437_v45 = vpop.xlane.xlu1 %436  ;;  %v435_v46 = vpop.xlane.xlu0 %434 }
 0x172   : > { %v443_v47 = vpop.xlane.xlu1 %442  ;;  %v439_v48 = vpop.xlane.xlu0 %438 }
 0x176   : > { %v447_v50 = vpop.xlane.xlu1 %446  ;;  %v441_v51 = vpop.xlane.xlu0 %440 }
 0x17a   : > { %v445_v52 = vpop.xlane.xlu0 %444  ;;  %v459_v53 = vpop.xlane.xlu1 %458 }
 0x17b   : > { %v479_v54 = vsel %vm476_vm0, %v435_v46, %v459_v53 }
 0x17c   : > { %488 = vst.msk [vmem:[%s244_s10] sm:$0xff] %vm487_vm1, %v479_v54 }
 0x17e   : > { %v449_v55 = vpop.xlane.xlu0 %448  ;;  %v463_v56 = vpop.xlane.xlu1 %462 }
 0x17f   : > { %v481_v57 = vsel %vm476_vm0, %v439_v48, %v463_v56 }
 0x180   : > { %490 = vst.msk [vmem:[%s244_s10 + $0x10] sm:$0xff] %vm487_vm1, %v481_v57 }
 0x182   : > { %v461_v19 = vpop.xlane.xlu0 %460  ;;  %v467_v58 = vpop.xlane.xlu1 %466 }
 0x183   : > { %v480_v59 = vsel %vm476_vm0, %v437_v45, %v461_v19  ;;  %v483_v60 = vsel %vm476_vm0, %v443_v47, %v467_v58 }
 0x184   : > { %489 = vst.msk [vmem:[%s244_s10 + $0x8] sm:$0xff] %vm487_vm1, %v480_v59  ;;  %492 = vst.msk [vmem:[%s244_s10 + $0x20] sm:$0xff] %vm487_vm1, %v483_v60 }
 0x186   : > { %v465_v61 = vpop.xlane.xlu0 %464  ;;  %v471_v62 = vpop.xlane.xlu1 %470 }
 0x187   : > { %v482_v63 = vsel %vm476_vm0, %v441_v51, %v465_v61  ;;  %v485_v0 = vsel %vm476_vm0, %v447_v50, %v471_v62 }
 0x188   : > { %491 = vst.msk [vmem:[%s244_s10 + $0x18] sm:$0xff] %vm487_vm1, %v482_v63  ;;  %494 = vst.msk [vmem:[%s244_s10 + $0x30] sm:$0xff] %vm487_vm1, %v485_v0 }
 0x18a   : > { %v469_v1 = vpop.xlane.xlu0 %468 }
 0x18b   : > { %v484_v2 = vsel %vm476_vm0, %v445_v52, %v469_v1 }
 0x18c   : > { %493 = vst.msk [vmem:[%s244_s10 + $0x28] sm:$0xff] %vm487_vm1, %v484_v2 }
 0x18e   : > { %v473_v3 = vpop.xlane.xlu0 %472 }
 0x18f   : > { %v486_v4 = vsel %vm476_vm0, %v449_v55, %v473_v3 }
 0x190   : > { %495 = vst.msk [vmem:[%s244_s10 + $0x38] sm:$0xff] %vm487_vm1, %v486_v4 }
 0x191 PF: > { %s532_s27 = sand.u32 1, %s788_s15   ;;  %p1133_p12 = scmp.ne.s32.totalorder %s1129_s28, 0 }
 0x192   : > { %p1134_p10 = scmp.ge.s32.totalorder %s800_s18, 2  ;;  %s533_s14 = scalar_lea.sflag [#allocation4], %s532_s27 }
 0x194   : > { %p652_p1 = pnand %p1134_p10, %p1133_p12 }
 0x196   : > { %783 = dma.done.wait (!%p652_p1), %s533_s14, 1024  }
 0x197   : > { %785 = vsyncadd (!%p652_p1), %s533_s14, 4294966272  ;;  %p18_p3 = scmp.ge.s32.totalorder %s863_s21, 4   ;;  %s1135_s15 = smov %s792_s16 }
 0x198   : > { %s1136_s16 = smov %s796_s17  ;;  %s1137_s17 = smov %s875_s24 }
 0x199   : > { %s1138_s18 = smov %s863_s21  ;;  %20 = sbr.rel (!%p18_p3) target bundleno = 5 (0x5), region = 92 }
 0x1a0   :  { %546 = vsyncpa [#allocation3], 1 }
 0x1a1   :  { %548 = vsyncpa [#allocation3 + $0x1], 1 }
 0x1a2   :  { %549 = vsyncpa [#allocation4], 1 }
 0x1a3   :  { %551 = vsyncpa [#allocation4 + $0x1], 1 }

</bundles_post_ra>
